<compile_context>
chip_gen: v6e
topology: v6e:2x2x1
jax: 0.10.0
libtpu: 0.0.40
codegen_flags: <defaults>
</compile_context>

<pallas_src>
import numpy as np
import jax
import jax.numpy as jnp
from jax.experimental import pallas as pl
from jax.experimental.pallas import tpu as pltpu

LANE = 128


def _round_up(x, m):
    return -(-x // m) * m


# ----------------------------------------------------------------------------
# Pallas kernel: per-type fused y_layer + obs_layer matmuls, lane-dense outputs
# ----------------------------------------------------------------------------
def _hi_decoder_kernel(z_ref, wy_ref, by_ref, wobs_ref, bobs_ref,
                       y_ref, theta_ref):
    # z:     (TB, z_dim)
    # wy:    (n_types, z_dim, Y_PAD)    by:   (n_types, 1, Y_PAD)
    # wobs:  (n_types, Y_PAD, O_PAD)    bobs: (n_types, 1, O_PAD)
    # y:     (n_types, TB, Y_PAD)       theta:(n_types, TB, O_PAD)
    z = z_ref[...]
    n_types = wy_ref.shape[0]
    for t in range(n_types):  # static unroll (n_types is small & static)
        # y_t = z @ Wy_t + by_t   (lane-dense, padded columns are exact zeros)
        y_t = jnp.dot(z, wy_ref[t],
                      preferred_element_type=jnp.float32) + by_ref[t]
        y_ref[t] = y_t.astype(y_ref.dtype)
        # theta_t = y_t @ Wobs_t + bobs_t  ('cat' leading zero column is a
        # zero column of Wobs_t/bobs_t, padded rows/cols are exact zeros)
        th_t = jnp.dot(y_t, wobs_ref[t],
                       preferred_element_type=jnp.float32) + bobs_ref[t]
        theta_ref[t] = th_t.astype(theta_ref.dtype)


def hi_decoder_pallas(z, wy3, by3, wobs3, bobs3, *, batch_tile=512):
    B, z_dim = z.shape
    n_types, _, y_pad_dim = wy3.shape
    o_pad_dim = wobs3.shape[2]

    if B <= batch_tile:
        # Small batch: no grid at all (avoid per-step grid scaffolding);
        # whole problem is a few KiB, pin everything in VMEM.
        b_pad = _round_up(B, 8)
        tiled = False
    else:
        b_pad = _round_up(B, batch_tile)
        tiled = True

    if b_pad != B:
        z = jnp.pad(z, ((0, b_pad - B), (0, 0)))

    out_shape = (jax.ShapeDtypeStruct((n_types, b_pad, y_pad_dim), jnp.float32),
                 jax.ShapeDtypeStruct((n_types, b_pad, o_pad_dim), jnp.float32))

    if not tiled:
        vmem = pl.BlockSpec(memory_space=pltpu.MemorySpace.VMEM)
        y_out, theta_out = pl.pallas_call(
            _hi_decoder_kernel,
            out_shape=out_shape,
            in_specs=[vmem, vmem, vmem, vmem, vmem],
            out_specs=(vmem, vmem),
        )(z, wy3, by3, wobs3, bobs3)
    else:
        tb = batch_tile
        grid = (b_pad // tb,)
        y_out, theta_out = pl.pallas_call(
            _hi_decoder_kernel,
            out_shape=out_shape,
            grid=grid,
            in_specs=[
                pl.BlockSpec((tb, z_dim), lambda i: (i, 0)),
                pl.BlockSpec((n_types, z_dim, y_pad_dim), lambda i: (0, 0, 0)),
                pl.BlockSpec((n_types, 1, y_pad_dim), lambda i: (0, 0, 0)),
                pl.BlockSpec((n_types, y_pad_dim, o_pad_dim),
                             lambda i: (0, 0, 0)),
                pl.BlockSpec((n_types, 1, o_pad_dim), lambda i: (0, 0, 0)),
            ],
            out_specs=(
                pl.BlockSpec((n_types, tb, y_pad_dim), lambda i: (0, i, 0)),
                pl.BlockSpec((n_types, tb, o_pad_dim), lambda i: (0, i, 0)),
            ),
            compiler_params=pltpu.CompilerParams(
                dimension_semantics=("parallel",)),
        )(z, wy3, by3, wobs3, bobs3)

    # Slice off batch padding only (lane padding is handled by the wrapper).
    return y_out[:, :B, :], theta_out[:, :B, :]


# ----------------------------------------------------------------------------
# Parameter construction (mirrors HIDecoder.__init__ shapes / init)
# ----------------------------------------------------------------------------
def build_hi_decoder_params(key, dims, types_list):
    z_dim, h_dim, y_dim, x_dim = dims
    n_types = len(types_list)
    y_out = y_dim * n_types

    # theta_cov_indexes exactly as in the reference __init__
    idx = [0]
    for t in types_list:
        if t['type'] in ('pos', 'real'):
            idx.append(idx[-1] + 2 * t['dim'])
        elif t['type'] == 'count':
            idx.append(idx[-1] + 1)
        else:  # 'cat' ('ordinal' not used in this synthetic setup)
            idx.append(idx[-1] + t['dim'])
    out_dims = [idx[i + 1] - idx[i] for i in range(n_types)]

    y_pad_dim = max(LANE, _round_up(y_dim, LANE))
    o_pad_dim = max(LANE, _round_up(max(out_dims), LANE))

    cnt = [0]

    def nk():
        k = jax.random.fold_in(key, cnt[0])
        cnt[0] += 1
        return k

    # y_layer: nn.Linear(z_dim, y_out), weight ~ N(0, 0.005), default bias init
    Wy = 0.005 * jax.random.normal(nk(), (y_out, z_dim), jnp.float32)
    bnd = 1.0 / np.sqrt(z_dim)
    by = jax.random.uniform(nk(), (y_out,), jnp.float32, -bnd, bnd)
    Wy_np, by_np = np.asarray(Wy), np.asarray(by)

    wy3 = np.zeros((n_types, z_dim, y_pad_dim), np.float32)
    by3 = np.zeros((n_types, 1, y_pad_dim), np.float32)
    for t in range(n_types):
        wy3[t, :, :y_dim] = Wy_np[t * y_dim:(t + 1) * y_dim, :].T
        by3[t, 0, :y_dim] = by_np[t * y_dim:(t + 1) * y_dim]

    # obs_layers packed per type into (Y_PAD, O_PAD) slabs
    wobs3 = np.zeros((n_types, y_pad_dim, o_pad_dim), np.float32)
    bobs3 = np.zeros((n_types, 1, o_pad_dim), np.float32)
    bnd_y = 1.0 / np.sqrt(y_dim)
    raw_obs = []

    def lin(out_dim):
        W = 0.005 * jax.random.normal(nk(), (out_dim, y_dim), jnp.float32)
        b = jax.random.uniform(nk(), (out_dim,), jnp.float32, -bnd_y, bnd_y)
        return np.asarray(W), np.asarray(b)

    for i, t in enumerate(types_list):
        d = t['dim']
        layers = []
        if t['type'] in ('real', 'pos'):
            for j in range(2):
                W, b = lin(d)
                layers.append((W, b))
                c0 = j * d
                wobs3[i, :y_dim, c0:c0 + d] = W.T
                bobs3[i, 0, c0:c0 + d] = b
        elif t['type'] == 'count':
            W, b = lin(d)
            layers.append((W, b))
            wobs3[i, :y_dim, :d] = W.T
            bobs3[i, 0, :d] = b
        elif t['type'] == 'cat':
            # Linear(y_dim, d-1); leading zero column kept at col 0
            W, b = lin(d - 1)
            layers.append((W, b))
            wobs3[i, :y_dim, 1:d] = W.T
            bobs3[i, 0, 1:d] = b
        else:
            # TODO(synk): 'ordinal' type (needs the extra thermometer layer)
            raise NotImplementedError(t['type'])
        raw_obs.append(layers)

    return {
        'wy3': jnp.asarray(wy3), 'by3': jnp.asarray(by3),
        'wobs3': jnp.asarray(wobs3), 'bobs3': jnp.asarray(bobs3),
        'theta_cov_indexes': idx, 'out_dims': out_dims,
        'n_types': n_types, 'y_dim': y_dim,
        'raw': {
            'Wy': jnp.asarray(Wy_np), 'by': jnp.asarray(by_np),
            'obs': [[(jnp.asarray(W), jnp.asarray(b)) for (W, b) in ls]
                    for ls in raw_obs],
        },
    }


# ----------------------------------------------------------------------------
# Forward wrapper (glue in plain JAX)
# ----------------------------------------------------------------------------
def hi_decoder_forward(params, z, miss_list=None, *, batch_tile=512):
    y_pad, theta_pad = hi_decoder_pallas(
        z, params['wy3'], params['by3'], params['wobs3'], params['bobs3'],
        batch_tile=batch_tile)
    n_types, y_dim = params['n_types'], params['y_dim']
    # y_grouped == reshape(y_layer(z), (B, n_types, y_dim))
    y_grouped = jnp.transpose(y_pad[:, :, :y_dim], (1, 0, 2))
    # params_x: per-variable theta slices (what feeds each loglik_* function)
    params_x = [theta_pad[i, :, :params['out_dims'][i]]
                for i in range(n_types)]
    # theta == torch.cat of the per-type obs outputs along features
    theta = jnp.concatenate(params_x, axis=1)
    # TODO(synk): log_p_x / log_p_x_missing / samples_x require the external
    # `loglik` module (loglik_real/pos/count/cat), not part of HIDecoder.
    return y_grouped, theta, params_x


# Pure-JAX reference that mirrors the PyTorch module (validates packing too).
def reference_forward(params, z, types_list):
    raw, y_dim = params['raw'], params['y_dim']
    y = z @ raw['Wy'].T + raw['by']
    B = z.shape[0]
    parts = []
    for i, t in enumerate(types_list):
        y_i = y[:, i * y_dim:(i + 1) * y_dim]
        outs = [y_i @ W.T + b for (W, b) in raw['obs'][i]]
        out = jnp.concatenate(outs, axis=1) if len(outs) > 1 else outs[0]
        if t['type'] == 'cat':
            out = jnp.concatenate([jnp.zeros((B, 1), out.dtype), out], axis=1)
        parts.append(out)
    return y, jnp.concatenate(parts, axis=1)


if __name__ == "__main__":
    key = jax.random.PRNGKey(0)

    # dims = [z_dim, [hidden_dims], y_dim, x_dim]
    z_dim, h_dim, y_dim, x_dim = 8, [32], 5, 7
    types_list = [
        {'type': 'real',  'dim': 2},
        {'type': 'pos',   'dim': 1},
        {'type': 'count', 'dim': 1},
        {'type': 'cat',   'dim': 3},
    ]
    B = 8

    kp, kz, km = jax.random.split(key, 3)
    params = build_hi_decoder_params(kp, [z_dim, h_dim, y_dim, x_dim],
                                     types_list)
    z = jax.random.normal(kz, (B, z_dim), jnp.float32)
    miss_list = (jax.random.uniform(km, (B, len(types_list))) > 0.3
                 ).astype(jnp.float32)

    # Small-batch path (grid-free, whole problem VMEM-resident).
    y_grouped, theta, params_x = hi_decoder_forward(params, z, miss_list)
    jax.block_until_ready(theta)

    y_ref, theta_ref = reference_forward(params, z, types_list)
    assert jnp.allclose(theta, theta_ref, atol=1e-5, rtol=1e-5)
    assert jnp.allclose(y_grouped,
                        y_ref.reshape(B, len(types_list), y_dim),
                        atol=1e-5, rtol=1e-5)
    assert theta.shape == (B, params['theta_cov_indexes'][-1])

    # Larger batch exercises the batch-tiled "parallel" grid path.
    B2 = 512
    z2 = jax.random.normal(jax.random.fold_in(kz, 1), (B2, z_dim), jnp.float32)
    y_g2, theta2, _ = hi_decoder_forward(params, z2, batch_tile=256)
    jax.block_until_ready(theta2)
    y_ref2, theta_ref2 = reference_forward(params, z2, types_list)
    assert jnp.allclose(theta2, theta_ref2, atol=1e-5, rtol=1e-5)
    assert jnp.allclose(y_g2,
                        y_ref2.reshape(B2, len(types_list), y_dim),
                        atol=1e-5, rtol=1e-5)

    print("KERNEL_OK")
</pallas_src>

<mosaic_0001>
module attributes {stable_mosaic.version = 11 : i64} {
  func.func @_hi_decoder_kernel(%arg0: memref<8x8xf32, #tpu.memory_space<vmem>>, %arg1: memref<4x8x128xf32, #tpu.memory_space<vmem>>, %arg2: memref<4x1x128xf32, #tpu.memory_space<vmem>>, %arg3: memref<4x128x128xf32, #tpu.memory_space<vmem>>, %arg4: memref<4x1x128xf32, #tpu.memory_space<vmem>>, %arg5: memref<4x8x128xf32, #tpu.memory_space<vmem>>, %arg6: memref<4x8x128xf32, #tpu.memory_space<vmem>>) attributes {dimension_semantics = [], scalar_prefetch = 0 : i64, scratch_operands = 0 : i64, tpu.core_type = #tpu.core_type<tc>} {
    %c0 = arith.constant 0 : index
    %c0_0 = arith.constant 0 : index
    %0 = vector.load %arg0[%c0, %c0_0] : memref<8x8xf32, #tpu.memory_space<vmem>>, vector<8x8xf32>
    %c0_1 = arith.constant 0 : index
    %c0_2 = arith.constant 0 : index
    %c0_3 = arith.constant 0 : index
    %1 = vector.load %arg1[%c0_1, %c0_2, %c0_3] : memref<4x8x128xf32, #tpu.memory_space<vmem>>, vector<1x8x128xf32>
    %2 = vector.shape_cast %1 : vector<1x8x128xf32> to vector<8x128xf32>
    %cst = arith.constant dense<0.000000e+00> : vector<8x128xf32>
    %3 = tpu.matmul %0, %2, %cst {dimension_numbers = #tpu.dot_dimension_numbers<[1], [0], [0], [1], [0, 0, 1, 1], [], []>} : vector<8x8xf32>, vector<8x128xf32>, vector<8x128xf32> -> vector<8x128xf32>
    %c0_4 = arith.constant 0 : index
    %c0_5 = arith.constant 0 : index
    %c0_6 = arith.constant 0 : index
    %4 = vector.load %arg2[%c0_4, %c0_5, %c0_6] : memref<4x1x128xf32, #tpu.memory_space<vmem>>, vector<1x1x128xf32>
    %5 = vector.shape_cast %4 : vector<1x1x128xf32> to vector<1x128xf32>
    %6 = vector.broadcast %5 : vector<1x128xf32> to vector<8x128xf32>
    %7 = arith.addf %3, %6 : vector<8x128xf32>
    %c0_7 = arith.constant 0 : index
    %c0_8 = arith.constant 0 : index
    %c0_9 = arith.constant 0 : index
    %8 = vector.load %arg5[%c0_7, %c0_8, %c0_9] : memref<4x8x128xf32, #tpu.memory_space<vmem>>, vector<1x8x128xf32>
    %9 = vector.shape_cast %8 : vector<1x8x128xf32> to vector<8x128xf32>
    %10 = vector.shape_cast %7 : vector<8x128xf32> to vector<1x8x128xf32>
    tpu.vector_store %arg5[%c0_7, %c0_8, %c0_9], %10 {strides = array<i32>} : memref<4x8x128xf32, #tpu.memory_space<vmem>>, vector<1x8x128xf32>,
    %c0_10 = arith.constant 0 : index
    %c0_11 = arith.constant 0 : index
    %c0_12 = arith.constant 0 : index
    %11 = vector.load %arg3[%c0_10, %c0_11, %c0_12] : memref<4x128x128xf32, #tpu.memory_space<vmem>>, vector<1x128x128xf32>
    %12 = vector.shape_cast %11 : vector<1x128x128xf32> to vector<128x128xf32>
    %cst_13 = arith.constant dense<0.000000e+00> : vector<8x128xf32>
    %13 = tpu.matmul %7, %12, %cst_13 {dimension_numbers = #tpu.dot_dimension_numbers<[1], [0], [0], [1], [0, 0, 1, 1], [], []>} : vector<8x128xf32>, vector<128x128xf32>, vector<8x128xf32> -> vector<8x128xf32>
    %c0_14 = arith.constant 0 : index
    %c0_15 = arith.constant 0 : index
    %c0_16 = arith.constant 0 : index
    %14 = vector.load %arg4[%c0_14, %c0_15, %c0_16] : memref<4x1x128xf32, #tpu.memory_space<vmem>>, vector<1x1x128xf32>
    %15 = vector.shape_cast %14 : vector<1x1x128xf32> to vector<1x128xf32>
    %16 = vector.broadcast %15 : vector<1x128xf32> to vector<8x128xf32>
    %17 = arith.addf %13, %16 : vector<8x128xf32>
    %c0_17 = arith.constant 0 : index
    %c0_18 = arith.constant 0 : index
    %c0_19 = arith.constant 0 : index
    %18 = vector.load %arg6[%c0_17, %c0_18, %c0_19] : memref<4x8x128xf32, #tpu.memory_space<vmem>>, vector<1x8x128xf32>
    %19 = vector.shape_cast %18 : vector<1x8x128xf32> to vector<8x128xf32>
    %20 = vector.shape_cast %17 : vector<8x128xf32> to vector<1x8x128xf32>
    tpu.vector_store %arg6[%c0_17, %c0_18, %c0_19], %20 {strides = array<i32>} : memref<4x8x128xf32, #tpu.memory_space<vmem>>, vector<1x8x128xf32>,
    %c1 = arith.constant 1 : index
    %c0_20 = arith.constant 0 : index
    %c0_21 = arith.constant 0 : index
    %21 = vector.load %arg1[%c1, %c0_20, %c0_21] : memref<4x8x128xf32, #tpu.memory_space<vmem>>, vector<1x8x128xf32>
    %22 = vector.shape_cast %21 : vector<1x8x128xf32> to vector<8x128xf32>
    %cst_22 = arith.constant dense<0.000000e+00> : vector<8x128xf32>
    %23 = tpu.matmul %0, %22, %cst_22 {dimension_numbers = #tpu.dot_dimension_numbers<[1], [0], [0], [1], [0, 0, 1, 1], [], []>} : vector<8x8xf32>, vector<8x128xf32>, vector<8x128xf32> -> vector<8x128xf32>
    %c1_23 = arith.constant 1 : index
    %c0_24 = arith.constant 0 : index
    %c0_25 = arith.constant 0 : index
    %24 = vector.load %arg2[%c1_23, %c0_24, %c0_25] : memref<4x1x128xf32, #tpu.memory_space<vmem>>, vector<1x1x128xf32>
    %25 = vector.shape_cast %24 : vector<1x1x128xf32> to vector<1x128xf32>
    %26 = vector.broadcast %25 : vector<1x128xf32> to vector<8x128xf32>
    %27 = arith.addf %23, %26 : vector<8x128xf32>
    %c1_26 = arith.constant 1 : index
    %c0_27 = arith.constant 0 : index
    %c0_28 = arith.constant 0 : index
    %28 = vector.load %arg5[%c1_26, %c0_27, %c0_28] : memref<4x8x128xf32, #tpu.memory_space<vmem>>, vector<1x8x128xf32>
    %29 = vector.shape_cast %28 : vector<1x8x128xf32> to vector<8x128xf32>
    %30 = vector.shape_cast %27 : vector<8x128xf32> to vector<1x8x128xf32>
    tpu.vector_store %arg5[%c1_26, %c0_27, %c0_28], %30 {strides = array<i32>} : memref<4x8x128xf32, #tpu.memory_space<vmem>>, vector<1x8x128xf32>,
    %c1_29 = arith.constant 1 : index
    %c0_30 = arith.constant 0 : index
    %c0_31 = arith.constant 0 : index
    %31 = vector.load %arg3[%c1_29, %c0_30, %c0_31] : memref<4x128x128xf32, #tpu.memory_space<vmem>>, vector<1x128x128xf32>
    %32 = vector.shape_cast %31 : vector<1x128x128xf32> to vector<128x128xf32>
    %cst_32 = arith.constant dense<0.000000e+00> : vector<8x128xf32>
    %33 = tpu.matmul %27, %32, %cst_32 {dimension_numbers = #tpu.dot_dimension_numbers<[1], [0], [0], [1], [0, 0, 1, 1], [], []>} : vector<8x128xf32>, vector<128x128xf32>, vector<8x128xf32> -> vector<8x128xf32>
    %c1_33 = arith.constant 1 : index
    %c0_34 = arith.constant 0 : index
    %c0_35 = arith.constant 0 : index
    %34 = vector.load %arg4[%c1_33, %c0_34, %c0_35] : memref<4x1x128xf32, #tpu.memory_space<vmem>>, vector<1x1x128xf32>
    %35 = vector.shape_cast %34 : vector<1x1x128xf32> to vector<1x128xf32>
    %36 = vector.broadcast %35 : vector<1x128xf32> to vector<8x128xf32>
    %37 = arith.addf %33, %36 : vector<8x128xf32>
    %c1_36 = arith.constant 1 : index
    %c0_37 = arith.constant 0 : index
    %c0_38 = arith.constant 0 : index
    %38 = vector.load %arg6[%c1_36, %c0_37, %c0_38] : memref<4x8x128xf32, #tpu.memory_space<vmem>>, vector<1x8x128xf32>
    %39 = vector.shape_cast %38 : vector<1x8x128xf32> to vector<8x128xf32>
    %40 = vector.shape_cast %37 : vector<8x128xf32> to vector<1x8x128xf32>
    tpu.vector_store %arg6[%c1_36, %c0_37, %c0_38], %40 {strides = array<i32>} : memref<4x8x128xf32, #tpu.memory_space<vmem>>, vector<1x8x128xf32>,
    %c2 = arith.constant 2 : index
    %c0_39 = arith.constant 0 : index
    %c0_40 = arith.constant 0 : index
    %41 = vector.load %arg1[%c2, %c0_39, %c0_40] : memref<4x8x128xf32, #tpu.memory_space<vmem>>, vector<1x8x128xf32>
    %42 = vector.shape_cast %41 : vector<1x8x128xf32> to vector<8x128xf32>
    %cst_41 = arith.constant dense<0.000000e+00> : vector<8x128xf32>
    %43 = tpu.matmul %0, %42, %cst_41 {dimension_numbers = #tpu.dot_dimension_numbers<[1], [0], [0], [1], [0, 0, 1, 1], [], []>} : vector<8x8xf32>, vector<8x128xf32>, vector<8x128xf32> -> vector<8x128xf32>
    %c2_42 = arith.constant 2 : index
    %c0_43 = arith.constant 0 : index
    %c0_44 = arith.constant 0 : index
    %44 = vector.load %arg2[%c2_42, %c0_43, %c0_44] : memref<4x1x128xf32, #tpu.memory_space<vmem>>, vector<1x1x128xf32>
    %45 = vector.shape_cast %44 : vector<1x1x128xf32> to vector<1x128xf32>
    %46 = vector.broadcast %45 : vector<1x128xf32> to vector<8x128xf32>
    %47 = arith.addf %43, %46 : vector<8x128xf32>
    %c2_45 = arith.constant 2 : index
    %c0_46 = arith.constant 0 : index
    %c0_47 = arith.constant 0 : index
    %48 = vector.load %arg5[%c2_45, %c0_46, %c0_47] : memref<4x8x128xf32, #tpu.memory_space<vmem>>, vector<1x8x128xf32>
    %49 = vector.shape_cast %48 : vector<1x8x128xf32> to vector<8x128xf32>
    %50 = vector.shape_cast %47 : vector<8x128xf32> to vector<1x8x128xf32>
    tpu.vector_store %arg5[%c2_45, %c0_46, %c0_47], %50 {strides = array<i32>} : memref<4x8x128xf32, #tpu.memory_space<vmem>>, vector<1x8x128xf32>,
    %c2_48 = arith.constant 2 : index
    %c0_49 = arith.constant 0 : index
    %c0_50 = arith.constant 0 : index
    %51 = vector.load %arg3[%c2_48, %c0_49, %c0_50] : memref<4x128x128xf32, #tpu.memory_space<vmem>>, vector<1x128x128xf32>
    %52 = vector.shape_cast %51 : vector<1x128x128xf32> to vector<128x128xf32>
    %cst_51 = arith.constant dense<0.000000e+00> : vector<8x128xf32>
    %53 = tpu.matmul %47, %52, %cst_51 {dimension_numbers = #tpu.dot_dimension_numbers<[1], [0], [0], [1], [0, 0, 1, 1], [], []>} : vector<8x128xf32>, vector<128x128xf32>, vector<8x128xf32> -> vector<8x128xf32>
    %c2_52 = arith.constant 2 : index
    %c0_53 = arith.constant 0 : index
    %c0_54 = arith.constant 0 : index
    %54 = vector.load %arg4[%c2_52, %c0_53, %c0_54] : memref<4x1x128xf32, #tpu.memory_space<vmem>>, vector<1x1x128xf32>
    %55 = vector.shape_cast %54 : vector<1x1x128xf32> to vector<1x128xf32>
    %56 = vector.broadcast %55 : vector<1x128xf32> to vector<8x128xf32>
    %57 = arith.addf %53, %56 : vector<8x128xf32>
    %c2_55 = arith.constant 2 : index
    %c0_56 = arith.constant 0 : index
    %c0_57 = arith.constant 0 : index
    %58 = vector.load %arg6[%c2_55, %c0_56, %c0_57] : memref<4x8x128xf32, #tpu.memory_space<vmem>>, vector<1x8x128xf32>
    %59 = vector.shape_cast %58 : vector<1x8x128xf32> to vector<8x128xf32>
    %60 = vector.shape_cast %57 : vector<8x128xf32> to vector<1x8x128xf32>
    tpu.vector_store %arg6[%c2_55, %c0_56, %c0_57], %60 {strides = array<i32>} : memref<4x8x128xf32, #tpu.memory_space<vmem>>, vector<1x8x128xf32>,
    %c3 = arith.constant 3 : index
    %c0_58 = arith.constant 0 : index
    %c0_59 = arith.constant 0 : index
    %61 = vector.load %arg1[%c3, %c0_58, %c0_59] : memref<4x8x128xf32, #tpu.memory_space<vmem>>, vector<1x8x128xf32>
    %62 = vector.shape_cast %61 : vector<1x8x128xf32> to vector<8x128xf32>
    %cst_60 = arith.constant dense<0.000000e+00> : vector<8x128xf32>
    %63 = tpu.matmul %0, %62, %cst_60 {dimension_numbers = #tpu.dot_dimension_numbers<[1], [0], [0], [1], [0, 0, 1, 1], [], []>} : vector<8x8xf32>, vector<8x128xf32>, vector<8x128xf32> -> vector<8x128xf32>
    %c3_61 = arith.constant 3 : index
    %c0_62 = arith.constant 0 : index
    %c0_63 = arith.constant 0 : index
    %64 = vector.load %arg2[%c3_61, %c0_62, %c0_63] : memref<4x1x128xf32, #tpu.memory_space<vmem>>, vector<1x1x128xf32>
    %65 = vector.shape_cast %64 : vector<1x1x128xf32> to vector<1x128xf32>
    %66 = vector.broadcast %65 : vector<1x128xf32> to vector<8x128xf32>
    %67 = arith.addf %63, %66 : vector<8x128xf32>
    %c3_64 = arith.constant 3 : index
    %c0_65 = arith.constant 0 : index
    %c0_66 = arith.constant 0 : index
    %68 = vector.load %arg5[%c3_64, %c0_65, %c0_66] : memref<4x8x128xf32, #tpu.memory_space<vmem>>, vector<1x8x128xf32>
    %69 = vector.shape_cast %68 : vector<1x8x128xf32> to vector<8x128xf32>
    %70 = vector.shape_cast %67 : vector<8x128xf32> to vector<1x8x128xf32>
    tpu.vector_store %arg5[%c3_64, %c0_65, %c0_66], %70 {strides = array<i32>} : memref<4x8x128xf32, #tpu.memory_space<vmem>>, vector<1x8x128xf32>,
    %c3_67 = arith.constant 3 : index
    %c0_68 = arith.constant 0 : index
    %c0_69 = arith.constant 0 : index
    %71 = vector.load %arg3[%c3_67, %c0_68, %c0_69] : memref<4x128x128xf32, #tpu.memory_space<vmem>>, vector<1x128x128xf32>
    %72 = vector.shape_cast %71 : vector<1x128x128xf32> to vector<128x128xf32>
    %cst_70 = arith.constant dense<0.000000e+00> : vector<8x128xf32>
    %73 = tpu.matmul %67, %72, %cst_70 {dimension_numbers = #tpu.dot_dimension_numbers<[1], [0], [0], [1], [0, 0, 1, 1], [], []>} : vector<8x128xf32>, vector<128x128xf32>, vector<8x128xf32> -> vector<8x128xf32>
    %c3_71 = arith.constant 3 : index
    %c0_72 = arith.constant 0 : index
    %c0_73 = arith.constant 0 : index
    %74 = vector.load %arg4[%c3_71, %c0_72, %c0_73] : memref<4x1x128xf32, #tpu.memory_space<vmem>>, vector<1x1x128xf32>
    %75 = vector.shape_cast %74 : vector<1x1x128xf32> to vector<1x128xf32>
    %76 = vector.broadcast %75 : vector<1x128xf32> to vector<8x128xf32>
    %77 = arith.addf %73, %76 : vector<8x128xf32>
    %c3_74 = arith.constant 3 : index
    %c0_75 = arith.constant 0 : index
    %c0_76 = arith.constant 0 : index
    %78 = vector.load %arg6[%c3_74, %c0_75, %c0_76] : memref<4x8x128xf32, #tpu.memory_space<vmem>>, vector<1x8x128xf32>
    %79 = vector.shape_cast %78 : vector<1x8x128xf32> to vector<8x128xf32>
    %80 = vector.shape_cast %77 : vector<8x128xf32> to vector<1x8x128xf32>
    tpu.vector_store %arg6[%c3_74, %c0_75, %c0_76], %80 {strides = array<i32>} : memref<4x8x128xf32, #tpu.memory_space<vmem>>, vector<1x8x128xf32>,
    return
  }
}

</mosaic_0001>

<bundles_post_ra>
// kernel: tpu_custom_call.1
= control target key start
LH: loop header
LB: loop body
LE: loop exit
PB: predicated region body
PF: predicated region fallthrough
CT: control target
= control target key end

     0   :  { %12 = vsyncpa [#allocation3], 0  ;;  %s1403_s0 = inlined_call_operand.hbm [shape: f32[8,8], index: 0, kind: input, shape index: {}]   ;;  %s1404_s1 = inlined_call_operand.hbm [shape: f32[4,8,128], index: 1, kind: input, shape index: {}]   ;;  %s1405_s2 = inlined_call_operand.hbm [shape: f32[4,1,128], index: 2, kind: input, shape index: {}]   ;;  %s1406_s3 = inlined_call_operand.hbm [shape: f32[4,128,128], index: 3, kind: input, shape index: {}]   ;;  %s1407_s4 = inlined_call_operand.vmem [shape: f32[4,1,128], index: 4, kind: input, shape index: {}]   ;;  %s1408_s5 = inlined_call_operand.hbm [shape: f32[4,8,128], index: 5, kind: output, shape index: {0}]   ;;  %s1409_s6 = inlined_call_operand.hbm [shape: f32[4,8,128], index: 6, kind: output, shape index: {1}]  }
   0x1   :  { %13 = vsyncpa [#allocation6], 0 }
   0x2   :  { %14 = vsyncpa [#allocation9], 0 }
   0x3   :  { %15 = vsyncpa [#allocation4], 0 }
   0x4   :  { %16 = vsyncpa [#allocation12], 0  ;;  %s1220_s21 = smov [#allocation5]  }
   0x5   :  { %s32_s22 = sshll.u32 %s1220_s21, 4  ;;  %s33_s22 = int_to_ptr.vmem [resolvable:$true] %s32_s22 }
   0x6   :  { %s1098_s23 = scalar_lea.vmem %s33_s22, 512  ;;  %p1103_p1 = scmp.lt.s32.totalorder %s33_s22, %s33_s22 }
   0x7   :  { %p1099_p0 = scmp.ne.s32.totalorder %s33_s22, %s1098_s23  ;;  %p1104_p2 = scmp.lt.s32.totalorder %s1098_s23, %s1098_s23 }
   0x9   :  { %p1105_p3 = por %p1104_p2, %p1103_p1 }
   0xb   :  { %p1106_p4 = pnand %p1105_p3, %p1099_p0 }
   0xd   :  { %1109 = shalt.err (!%p1106_p4)
}
   0xe   :  { %s1221_s24 = smov 128   ;;  %s1222_s25 = smov 8  }
   0xf   :  { %38 = dma.hbm_to_vmem [thread:$0]  %s1404_s1, 512, %s33_s22, [#allocation6], %s1221_s24, %s1221_s24, %s1222_s25  }
  0x10   :  { %s1223_s28 = smov [#allocation2]   ;;  %s1224_s30 = smov [#allocation7]  }
  0x11   :  { %s23_s29 = sshll.u32 %s1223_s28, 4  ;;  %s44_s7 = sshll.u32 %s1224_s30, 4  ;;  %s24_s29 = int_to_ptr.vmem [resolvable:$true] %s23_s29  ;;  %s45_s7 = int_to_ptr.vmem [resolvable:$true] %s44_s7 }
  0x12   :  { %s1118_s8 = scalar_lea.vmem %s24_s29, 128  ;;  %p1123_p6 = scmp.lt.s32.totalorder %s24_s29, %s24_s29 }
  0x13   :  { %p1119_p5 = scmp.ne.s32.totalorder %s24_s29, %s1118_s8  ;;  %p1124_p7 = scmp.lt.s32.totalorder %s1118_s8, %s1118_s8 }
  0x15   :  { %p1125_p8 = por %p1124_p7, %p1123_p6 }
  0x17   :  { %p1126_p9 = pnand %p1125_p8, %p1119_p5 }
  0x19   :  { %1129 = shalt.err (!%p1126_p9)
}
  0x1a   :  { %26 = dma.hbm_to_vmem [thread:$0]  %s1403_s0, 128, %s24_s29, [#allocation3]  }
  0x1b   :  { %s1138_s11 = scalar_lea.vmem %s45_s7, 64  ;;  %p1143_p11 = scmp.lt.s32.totalorder %s45_s7, %s45_s7 }
  0x1c   :  { %p1139_p10 = scmp.ne.s32.totalorder %s45_s7, %s1138_s11  ;;  %p1144_p12 = scmp.lt.s32.totalorder %s1138_s11, %s1138_s11 }
  0x1e   :  { %p1145_p13 = por %p1144_p12, %p1143_p11 }
  0x20   :  { %p1146_p0 = pnand %p1145_p13, %p1139_p10 }
  0x22   :  { %1149 = shalt.err (!%p1146_p0)
}
  0x23   :  { %s1225_s1 = smov 16   ;;  %s1226_s12 = smov 1  }
  0x24   :  { %50 = dma.hbm_to_vmem [thread:$0]  %s1405_s2, 64, %s45_s7, [#allocation6], %s1225_s1, %s1225_s1, %s1226_s12  }
  0x25   :  { %s1227_s15 = smov [#allocation8]  }
  0x26   :  { %s56_s16 = sshll.u32 %s1227_s15, 4  ;;  %s57_s16 = int_to_ptr.vmem [resolvable:$true] %s56_s16 }
  0x27   :  { %s1158_s17 = scalar_lea.vmem %s57_s16, 8192  ;;  %p1163_p2 = scmp.lt.s32.totalorder %s57_s16, %s57_s16 }
  0x28   :  { %p1159_p1 = scmp.ne.s32.totalorder %s57_s16, %s1158_s17  ;;  %p1164_p3 = scmp.lt.s32.totalorder %s1158_s17, %s1158_s17 }
  0x2a   :  { %p1165_p4 = por %p1164_p3, %p1163_p2 }
  0x2c   :  { %p1166_p5 = pnand %p1165_p4, %p1159_p1 }
  0x2e   :  { %1169 = shalt.err (!%p1166_p5)
}
  0x2f   :  { %62 = dma.hbm_to_vmem [thread:$0]  %s1406_s3, 8192, %s57_s16, [#allocation9], %s1221_s24, %s1221_s24, %s1222_s25  }
  0x30   :  { %1210 = dma.done.wait [#allocation3], 128  }
  0x31   :  { %1211 = vsyncadd [#allocation3], 4294967168 }
  0x32   :  { %1212 = dma.done.wait [#allocation6], 576  }
  0x33   :  { %1213 = vsyncadd [#allocation6], 4294966720 }
  0x34   :  { %1214 = dma.done.wait [#allocation9], 8192  }
  0x35   :  { %1215 = vsyncadd [#allocation9], 4294959104  ;;  %v1228_v0 = vmov 0.0   ;;  %vm1229_vm0 = vmmov 0   ;;  %vm86_vm1 = vcmask 64512   ;;  %v78_v1 = vld [vmem:[#allocation5] sm:$0xff] }
  0x36   :  { %918 = vmatprep.subr.mxu1 %v1228_v0  ;;  %958 = vmatprep.subr.mxu0 %v1228_v0  ;;  %v256_v2 = vld [vmem:[#allocation5 + $0x8] sm:$0xff]  ;;  %v1291_v3 = vld [vmem:[#allocation2] sm:$0xff]  ;;  %v827_v36 = vld [vmem:[#allocation7] ss:$0 sm:$0xff]  ;;  %s1230_s21 = smov [#allocation10]  }
  0x37   :  { %920 = vmatprep.mubr.msk.f32.mxu1 %vm1229_vm0, %v1228_v0  ;;  %960 = vmatprep.mubr.msk.f32.mxu0 %vm1229_vm0, %v1228_v0  ;;  %v176_v4 = vld [vmem:[#allocation8 + $0x78] sm:$0xff]  ;;  %v175_v6 = vld [vmem:[#allocation8 + $0x70] sm:$0xff]  ;;  %v174_v8 = vld [vmem:[#allocation8 + $0x68] sm:$0xff]  ;;  %s797_s22 = sshll.u32 %s1230_s21, 4  ;;  %s798_s22 = int_to_ptr.vmem [resolvable:$true] %s797_s22 }
  0x38   :  { %919 = vmatpush3.msra.mxu1 %v78_v1  ;;  %959 = vmatpush3.msra.mxu0 %v256_v2  ;;  %v353_v5 = vld [vmem:[#allocation8 + $0xf8] sm:$0xff]  ;;  %v352_v7 = vld [vmem:[#allocation8 + $0xf0] sm:$0xff]  ;;  %v351_v9 = vld [vmem:[#allocation8 + $0xe8] sm:$0xff]  ;;  %s1170_s23 = scalar_lea.vmem %s798_s22, 512  ;;  %p1175_p7 = scmp.lt.s32.totalorder %s798_s22, %s798_s22 }
  0x39   :  { %921 = vmatmul.mubr.msk.f32.vlgmr.msra.gmra.mxu1 %vm86_vm1, %v1291_v3  ;;  %961 = vmatmul.mubr.msk.f32.vlgmr.msra.gmra.mxu0 %vm86_vm1, %v1291_v3  ;;  %v173_v10 = vld [vmem:[#allocation8 + $0x60] sm:$0xff]  ;;  %v172_v12 = vld [vmem:[#allocation8 + $0x58] sm:$0xff]  ;;  %v171_v14 = vld [vmem:[#allocation8 + $0x50] sm:$0xff]  ;;  %p1171_p6 = scmp.ne.s32.totalorder %s798_s22, %s1170_s23  ;;  %p1176_p8 = scmp.lt.s32.totalorder %s1170_s23, %s1170_s23 }
  0x3a   :  { %923 = vmatprep.subr.mxu1 %v1228_v0  ;;  %963 = vmatprep.subr.mxu0 %v1228_v0  ;;  %v350_v11 = vld [vmem:[#allocation8 + $0xe0] sm:$0xff]  ;;  %v349_v13 = vld [vmem:[#allocation8 + $0xd8] sm:$0xff]  ;;  %v348_v15 = vld [vmem:[#allocation8 + $0xd0] sm:$0xff] }
  0x3b   :  { %924 = vmatpush3.msra.mxu1 %v176_v4  ;;  %964 = vmatpush3.msra.mxu0 %v353_v5  ;;  %v170_v16 = vld [vmem:[#allocation8 + $0x48] sm:$0xff]  ;;  %v169_v18 = vld [vmem:[#allocation8 + $0x40] sm:$0xff]  ;;  %v168_v20 = vld [vmem:[#allocation8 + $0x38] sm:$0xff]  ;;  %p1177_p9 = por %p1176_p8, %p1175_p7 }
  0x3c   :  { %925 = vmatprep.subr.mxu1 %v1228_v0  ;;  %965 = vmatprep.subr.mxu0 %v1228_v0  ;;  %v347_v17 = vld [vmem:[#allocation8 + $0xc8] sm:$0xff]  ;;  %v346_v19 = vld [vmem:[#allocation8 + $0xc0] sm:$0xff]  ;;  %v345_v21 = vld [vmem:[#allocation8 + $0xb8] sm:$0xff] }
  0x3d   :  { %926 = vmatpush3.msra.mxu1 %v175_v6  ;;  %966 = vmatpush3.msra.mxu0 %v352_v7  ;;  %v167_v22 = vld [vmem:[#allocation8 + $0x30] sm:$0xff]  ;;  %v166_v24 = vld [vmem:[#allocation8 + $0x28] sm:$0xff]  ;;  %v165_v26 = vld [vmem:[#allocation8 + $0x20] sm:$0xff]  ;;  %p1178_p10 = pnand %p1177_p9, %p1171_p6 }
  0x3e   :  { %927 = vmatprep.subr.mxu1 %v1228_v0  ;;  %967 = vmatprep.subr.mxu0 %v1228_v0  ;;  %v344_v23 = vld [vmem:[#allocation8 + $0xb0] sm:$0xff]  ;;  %v343_v25 = vld [vmem:[#allocation8 + $0xa8] sm:$0xff]  ;;  %v342_v27 = vld [vmem:[#allocation8 + $0xa0] sm:$0xff] }
  0x3f   :  { %928 = vmatpush3.msra.mxu1 %v174_v8  ;;  %968 = vmatpush3.msra.mxu0 %v351_v9  ;;  %v164_v28 = vld [vmem:[#allocation8 + $0x18] sm:$0xff]  ;;  %v163_v30 = vld [vmem:[#allocation8 + $0x10] sm:$0xff]  ;;  %v162_v32 = vld [vmem:[#allocation8 + $0x8] sm:$0xff] }
  0x40   :  { %929 = vmatprep.subr.mxu1 %v1228_v0  ;;  %969 = vmatprep.subr.mxu0 %v1228_v0  ;;  %v341_v29 = vld [vmem:[#allocation8 + $0x98] sm:$0xff]  ;;  %v340_v31 = vld [vmem:[#allocation8 + $0x90] sm:$0xff]  ;;  %v339_v33 = vld [vmem:[#allocation8 + $0x88] sm:$0xff] }
  0x41   :  { %930 = vmatpush3.msra.mxu1 %v173_v10  ;;  %970 = vmatpush3.msra.mxu0 %v350_v11  ;;  %v161_v34 = vld [vmem:[#allocation8] sm:$0xff]  ;;  %v830_v37 = vld [vmem:[#allocation7 + $0x1] ss:$0 sm:$0xff]  ;;  %v435_v42 = vld [vmem:[#allocation5 + $0x10] sm:$0xff] }
  0x42   :  { %931 = vmatprep.subr.mxu1 %v1228_v0  ;;  %971 = vmatprep.subr.mxu0 %v1228_v0  ;;  %v338_v35 = vld [vmem:[#allocation8 + $0x80] sm:$0xff]  ;;  %v614_v43 = vld [vmem:[#allocation5 + $0x18] sm:$0xff]  ;;  %v530_v50 = vld [vmem:[#allocation8 + $0x168] sm:$0xff] }
  0x43   :  { %932 = vmatpush3.msra.mxu1 %v172_v12  ;;  %972 = vmatpush3.msra.mxu0 %v349_v13  ;;  %v532_v46 = vld [vmem:[#allocation8 + $0x178] sm:$0xff]  ;;  %v531_v48 = vld [vmem:[#allocation8 + $0x170] sm:$0xff]  ;;  %v709_v51 = vld [vmem:[#allocation8 + $0x1e8] sm:$0xff] }
  0x44   :  { %933 = vmatprep.subr.mxu1 %v1228_v0  ;;  %973 = vmatprep.subr.mxu0 %v1228_v0  ;;  %v711_v47 = vld [vmem:[#allocation8 + $0x1f8] sm:$0xff]  ;;  %v710_v49 = vld [vmem:[#allocation8 + $0x1f0] sm:$0xff]  ;;  %v529_v52 = vld [vmem:[#allocation8 + $0x160] sm:$0xff] }
  0x45   :  { %934 = vmatpush3.msra.mxu1 %v171_v14  ;;  %974 = vmatpush3.msra.mxu0 %v348_v15  ;;  %v708_v53 = vld [vmem:[#allocation8 + $0x1e0] sm:$0xff]  ;;  %v528_v54 = vld [vmem:[#allocation8 + $0x158] sm:$0xff]  ;;  %v527_v56 = vld [vmem:[#allocation8 + $0x150] sm:$0xff] }
  0x46   :  { %935 = vmatprep.subr.mxu1 %v1228_v0  ;;  %975 = vmatprep.subr.mxu0 %v1228_v0  ;;  %v707_v55 = vld [vmem:[#allocation8 + $0x1d8] sm:$0xff]  ;;  %v706_v57 = vld [vmem:[#allocation8 + $0x1d0] sm:$0xff]  ;;  %v526_v58 = vld [vmem:[#allocation8 + $0x148] sm:$0xff] }
  0x47   :  { %936 = vmatpush3.msra.mxu1 %v170_v16  ;;  %976 = vmatpush3.msra.mxu0 %v347_v17  ;;  %v705_v59 = vld [vmem:[#allocation8 + $0x1c8] sm:$0xff]  ;;  %v525_v60 = vld [vmem:[#allocation8 + $0x140] sm:$0xff]  ;;  %v524_v62 = vld [vmem:[#allocation8 + $0x138] sm:$0xff] }
  0x48   :  { %937 = vmatprep.subr.mxu1 %v1228_v0  ;;  %977 = vmatprep.subr.mxu0 %v1228_v0  ;;  %v704_v61 = vld [vmem:[#allocation8 + $0x1c0] sm:$0xff]  ;;  %v703_v63 = vld [vmem:[#allocation8 + $0x1b8] sm:$0xff]  ;;  %v523_v1 = vld [vmem:[#allocation8 + $0x130] sm:$0xff] }
  0x49   :  { %938 = vmatpush3.msra.mxu1 %v169_v18  ;;  %978 = vmatpush3.msra.mxu0 %v346_v19  ;;  %v702_v2 = vld [vmem:[#allocation8 + $0x1b0] sm:$0xff]  ;;  %v701_v4 = vld [vmem:[#allocation8 + $0x1a8] sm:$0xff]  ;;  %v521_v5 = vld [vmem:[#allocation8 + $0x120] sm:$0xff] }
  0x4a   :  { %939 = vmatprep.subr.mxu1 %v1228_v0  ;;  %979 = vmatprep.subr.mxu0 %v1228_v0  ;;  %v700_v6 = vld [vmem:[#allocation8 + $0x1a0] sm:$0xff]  ;;  %v520_v7 = vld [vmem:[#allocation8 + $0x118] sm:$0xff]  ;;  %v519_v9 = vld [vmem:[#allocation8 + $0x110] sm:$0xff] }
  0x4b   :  { %940 = vmatpush3.msra.mxu1 %v168_v20  ;;  %980 = vmatpush3.msra.mxu0 %v345_v21  ;;  %v699_v8 = vld [vmem:[#allocation8 + $0x198] sm:$0xff]  ;;  %v698_v10 = vld [vmem:[#allocation8 + $0x190] sm:$0xff]  ;;  %v518_v11 = vld [vmem:[#allocation8 + $0x108] sm:$0xff] }
  0x4c   :  { %941 = vmatprep.subr.mxu1 %v1228_v0  ;;  %981 = vmatprep.subr.mxu0 %v1228_v0  ;;  %v697_v12 = vld [vmem:[#allocation8 + $0x188] sm:$0xff]  ;;  %v517_v13 = vld [vmem:[#allocation8 + $0x100] sm:$0xff]  ;;  %v829_v15 = vld [vmem:[%s1407_s4] ss:$0 sm:$0xff] }
  0x4d   :  { %942 = vmatpush3.msra.mxu1 %v167_v22  ;;  %982 = vmatpush3.msra.mxu0 %v344_v23  ;;  %v696_v14 = vld [vmem:[#allocation8 + $0x180] sm:$0xff]  ;;  %v833_v16 = vld [vmem:[%s1407_s4 + $0x1] ss:$0 sm:$0xff]  ;;  %v834_v23 = vld [vmem:[#allocation7 + $0x2] ss:$0 sm:$0xff] }
  0x4e   :  { %943 = vmatprep.subr.mxu1 %v1228_v0  ;;  %983 = vmatprep.subr.mxu0 %v1228_v0 }
  0x4f   :  { %944 = vmatpush3.msra.mxu1 %v166_v24  ;;  %984 = vmatpush3.msra.mxu0 %v343_v25 }
  0x50   :  { %945 = vmatprep.subr.mxu1 %v1228_v0  ;;  %985 = vmatprep.subr.mxu0 %v1228_v0 }
  0x51   :  { %946 = vmatpush3.msra.mxu1 %v165_v26  ;;  %986 = vmatpush3.msra.mxu0 %v342_v27 }
  0x52   :  { %947 = vmatprep.subr.mxu1 %v1228_v0  ;;  %987 = vmatprep.subr.mxu0 %v1228_v0 }
  0x53   :  { %948 = vmatpush3.msra.mxu1 %v164_v28  ;;  %988 = vmatpush3.msra.mxu0 %v341_v29 }
  0x54   :  { %949 = vmatprep.subr.mxu1 %v1228_v0  ;;  %989 = vmatprep.subr.mxu0 %v1228_v0 }
  0x55   :  { %950 = vmatpush3.msra.mxu1 %v163_v30  ;;  %990 = vmatpush3.msra.mxu0 %v340_v31 }
  0x56   :  { %951 = vmatprep.subr.mxu1 %v1228_v0  ;;  %991 = vmatprep.subr.mxu0 %v1228_v0 }
  0x57   :  { %952 = vmatpush3.msra.mxu1 %v162_v32  ;;  %992 = vmatpush3.msra.mxu0 %v339_v33 }
  0x58   :  { %953 = vmatprep.subr.mxu1 %v1228_v0  ;;  %993 = vmatprep.subr.mxu0 %v1228_v0 }
  0x59   :  { %955 = vmatprep.mubr.msk.f32.mxu1 %vm1229_vm0, %v1228_v0  ;;  %995 = vmatprep.mubr.msk.f32.mxu0 %vm1229_vm0, %v1228_v0 }
  0x5a   :  { %954 = vmatpush3.msra.mxu1 %v161_v34  ;;  %994 = vmatpush3.msra.mxu0 %v338_v35 }
  0x5b   :  { %998 = vmatprep.subr.mxu1 %v1228_v0  ;;  %1038 = vmatprep.subr.mxu0 %v1228_v0 }
  0xf9   :  { %v156_v38 = vpop.f32.mrf.mxu1  ;;  %v331_v39 = vpop.f32.mrf.mxu0 }
  0xfa   :  { %v157_v40 = vadd.f32 %v827_v36, %v156_v38  ;;  %v332_v41 = vadd.f32 %v830_v37, %v331_v39 }
  0xfb   :  { %v922_v44 = vpop.f32.mrf.mxu1  ;;  %v962_v45 = vpop.f32.mrf.mxu0 }
  0xfc   :  { %160 = vst [vmem:[#allocation10] sm:$0xff] %v157_v40  ;;  %336 = vst [vmem:[#allocation10 + $0x8] sm:$0xff] %v332_v41  ;;  %956 = vmatmul.mubr.f32.vlgmr.msra.gmra.mxu1 %v157_v40  ;;  %996 = vmatmul.mubr.f32.vlgmr.msra.gmra.mxu0 %v332_v41 }
  0xfd   :  { %999 = vmatpush3.msra.mxu1 %v435_v42  ;;  %1039 = vmatpush3.msra.mxu0 %v614_v43 }
  0xfe   :  { %1000 = vmatprep.mubr.msk.f32.mxu1 %vm1229_vm0, %v1228_v0  ;;  %1040 = vmatprep.mubr.msk.f32.mxu0 %vm1229_vm0, %v1228_v0 }
  0xff   :  { %1003 = vmatprep.subr.mxu1 %v1228_v0  ;;  %1043 = vmatprep.subr.mxu0 %v1228_v0 }
 0x100   :  { %1001 = vmatmul.mubr.msk.f32.vlgmr.msra.gmra.mxu1 %vm86_vm1, %v1291_v3  ;;  %1041 = vmatmul.mubr.msk.f32.vlgmr.msra.gmra.mxu0 %vm86_vm1, %v1291_v3  ;;  %v522_v3 = vld [vmem:[#allocation8 + $0x128] sm:$0xff] }
 0x101   :  { %1004 = vmatpush3.msra.mxu1 %v532_v46  ;;  %1044 = vmatpush3.msra.mxu0 %v711_v47 }
 0x102   :  { %1005 = vmatprep.subr.mxu1 %v1228_v0  ;;  %1045 = vmatprep.subr.mxu0 %v1228_v0 }
 0x103   :  { %1006 = vmatpush3.msra.mxu1 %v531_v48  ;;  %1046 = vmatpush3.msra.mxu0 %v710_v49 }
 0x104   :  { %1007 = vmatprep.subr.mxu1 %v1228_v0  ;;  %1047 = vmatprep.subr.mxu0 %v1228_v0 }
 0x105   :  { %1008 = vmatpush3.msra.mxu1 %v530_v50  ;;  %1048 = vmatpush3.msra.mxu0 %v709_v51 }
 0x106   :  { %1009 = vmatprep.subr.mxu1 %v1228_v0  ;;  %1049 = vmatprep.subr.mxu0 %v1228_v0 }
 0x107   :  { %1010 = vmatpush3.msra.mxu1 %v529_v52  ;;  %1050 = vmatpush3.msra.mxu0 %v708_v53 }
 0x108   :  { %1011 = vmatprep.subr.mxu1 %v1228_v0  ;;  %1051 = vmatprep.subr.mxu0 %v1228_v0 }
 0x109   :  { %1012 = vmatpush3.msra.mxu1 %v528_v54  ;;  %1052 = vmatpush3.msra.mxu0 %v707_v55 }
 0x10a   :  { %1013 = vmatprep.subr.mxu1 %v1228_v0  ;;  %1053 = vmatprep.subr.mxu0 %v1228_v0 }
 0x10b   :  { %1014 = vmatpush3.msra.mxu1 %v527_v56  ;;  %1054 = vmatpush3.msra.mxu0 %v706_v57 }
 0x10c   :  { %1015 = vmatprep.subr.mxu1 %v1228_v0  ;;  %1055 = vmatprep.subr.mxu0 %v1228_v0 }
 0x10d   :  { %1016 = vmatpush3.msra.mxu1 %v526_v58  ;;  %1056 = vmatpush3.msra.mxu0 %v705_v59 }
 0x10e   :  { %1017 = vmatprep.subr.mxu1 %v1228_v0  ;;  %1057 = vmatprep.subr.mxu0 %v1228_v0 }
 0x10f   :  { %1018 = vmatpush3.msra.mxu1 %v525_v60  ;;  %1058 = vmatpush3.msra.mxu0 %v704_v61 }
 0x110   :  { %1019 = vmatprep.subr.mxu1 %v1228_v0  ;;  %1059 = vmatprep.subr.mxu0 %v1228_v0 }
 0x111   :  { %1020 = vmatpush3.msra.mxu1 %v524_v62  ;;  %1060 = vmatpush3.msra.mxu0 %v703_v63 }
 0x112   :  { %1021 = vmatprep.subr.mxu1 %v1228_v0  ;;  %1061 = vmatprep.subr.mxu0 %v1228_v0 }
 0x113   :  { %1022 = vmatpush3.msra.mxu1 %v523_v1  ;;  %1062 = vmatpush3.msra.mxu0 %v702_v2 }
 0x114   :  { %1023 = vmatprep.subr.mxu1 %v1228_v0  ;;  %1063 = vmatprep.subr.mxu0 %v1228_v0 }
 0x115   :  { %1024 = vmatpush3.msra.mxu1 %v522_v3  ;;  %1064 = vmatpush3.msra.mxu0 %v701_v4 }
 0x116   :  { %1025 = vmatprep.subr.mxu1 %v1228_v0  ;;  %1065 = vmatprep.subr.mxu0 %v1228_v0 }
 0x117   :  { %1026 = vmatpush3.msra.mxu1 %v521_v5  ;;  %1066 = vmatpush3.msra.mxu0 %v700_v6 }
 0x118   :  { %1027 = vmatprep.subr.mxu1 %v1228_v0  ;;  %1067 = vmatprep.subr.mxu0 %v1228_v0 }
 0x119   :  { %1035 = vmatprep.mubr.msk.f32.mxu1 %vm1229_vm0, %v1228_v0  ;;  %1075 = vmatprep.mubr.msk.f32.mxu0 %vm1229_vm0, %v1228_v0 }
 0x11a   :  { %1028 = vmatpush3.msra.mxu1 %v520_v7  ;;  %1068 = vmatpush3.msra.mxu0 %v699_v8 }
 0x11b   :  { %1029 = vmatprep.subr.mxu1 %v1228_v0  ;;  %1069 = vmatprep.subr.mxu0 %v1228_v0 }
 0x11c   :  { %1030 = vmatpush3.msra.mxu1 %v519_v9  ;;  %1070 = vmatpush3.msra.mxu0 %v698_v10 }
 0x11d   :  { %1031 = vmatprep.subr.mxu1 %v1228_v0  ;;  %1071 = vmatprep.subr.mxu0 %v1228_v0 }
 0x11e   :  { %1032 = vmatpush3.msra.mxu1 %v518_v11  ;;  %1072 = vmatpush3.msra.mxu0 %v697_v12 }
 0x11f   :  { %1033 = vmatprep.subr.mxu1 %v1228_v0  ;;  %1073 = vmatprep.subr.mxu0 %v1228_v0  ;;  %v838_v0 = vld [vmem:[#allocation7 + $0x3] ss:$0 sm:$0xff] }
 0x120   :  { %1034 = vmatpush3.msra.mxu1 %v517_v13  ;;  %1074 = vmatpush3.msra.mxu0 %v696_v14 }
 0x1bc   :  { %v250_v17 = vpop.f32.mrf.mxu1  ;;  %v428_v18 = vpop.f32.mrf.mxu0 }
 0x1bd   :  { %v251_v19 = vadd.f32 %v829_v15, %v250_v17  ;;  %v429_v20 = vadd.f32 %v833_v16, %v428_v18 }
 0x1be   :  { %v957_v21 = vpop.f32.mrf.mxu1  ;;  %v997_v22 = vpop.f32.mrf.mxu0 }
 0x1bf   :  { %254 = vst [vmem:[#allocation11] sm:$0xff] %v251_v19  ;;  %433 = vst [vmem:[#allocation11 + $0x8] sm:$0xff] %v429_v20 }
 0x1c0   :  { %v510_v24 = vpop.f32.mrf.mxu1  ;;  %v689_v25 = vpop.f32.mrf.mxu0 }
 0x1c1   :  { %v511_v26 = vadd.f32 %v834_v23, %v510_v24  ;;  %v690_v27 = vadd.f32 %v838_v0, %v689_v25 }
 0x1c2   :  { %v1002_v28 = vpop.f32.mrf.mxu1  ;;  %v1042_v29 = vpop.f32.mrf.mxu0 }
 0x1c3   :  { %515 = vst [vmem:[#allocation10 + $0x10] sm:$0xff] %v511_v26  ;;  %694 = vst [vmem:[#allocation10 + $0x18] sm:$0xff] %v690_v27  ;;  %1036 = vmatmul.mubr.f32.vlgmr.msra.gmra.mxu1 %v511_v26  ;;  %1076 = vmatmul.mubr.f32.vlgmr.msra.gmra.mxu0 %v690_v27 }
 0x1c4   :  { %1181 = shalt.err (!%p1178_p10)
}
 0x1c5   :  { %803 = dma.vmem_to_hbm [thread:$0]  %s798_s22, 512, %s1408_s5, [#allocation4], %s1221_s24, %s1221_s24, %s1222_s25  }
 0x1c6   :  { %v837_v30 = vld [vmem:[%s1407_s4 + $0x2] ss:$0 sm:$0xff]  ;;  %v841_v31 = vld [vmem:[%s1407_s4 + $0x3] ss:$0 sm:$0xff]  ;;  %s1231_s8 = smov [#allocation11]  }
 0x1c7   :  { %s809_s9 = sshll.u32 %s1231_s8, 4  ;;  %s810_s9 = int_to_ptr.vmem [resolvable:$true] %s809_s9 }
 0x1c8   :  { %s1190_s5 = scalar_lea.vmem %s810_s9, 512  ;;  %p1195_p12 = scmp.lt.s32.totalorder %s810_s9, %s810_s9 }
 0x1c9   :  { %p1191_p11 = scmp.ne.s32.totalorder %s810_s9, %s1190_s5  ;;  %p1196_p13 = scmp.lt.s32.totalorder %s1190_s5, %s1190_s5 }
 0x1cb   :  { %p1197_p0 = por %p1196_p13, %p1195_p12 }
 0x1cd   :  { %p1198_p1 = pnand %p1197_p0, %p1191_p11 }
 0x283   :  { %v607_v32 = vpop.f32.mrf.mxu1  ;;  %v786_v33 = vpop.f32.mrf.mxu0 }
 0x284   :  { %v608_v34 = vadd.f32 %v837_v30, %v607_v32  ;;  %v787_v35 = vadd.f32 %v841_v31, %v786_v33 }
 0x285   :  { %v1037_v36 = vpop.f32.mrf.mxu1  ;;  %v1077_v37 = vpop.f32.mrf.mxu0 }
 0x286   :  { %612 = vst [vmem:[#allocation11 + $0x10] sm:$0xff] %v608_v34  ;;  %791 = vst [vmem:[#allocation11 + $0x18] sm:$0xff] %v787_v35 }
 0x287   :  { %1201 = shalt.err (!%p1198_p1)
}
 0x288   :  { %815 = dma.vmem_to_hbm [thread:$0]  %s810_s9, 512, %s1409_s6, [#allocation12], %s1221_s24, %s1221_s24, %s1222_s25  }
 0x289   :  { %1216 = dma.done.wait [#allocation4], 512  }
 0x28a   :  { %1217 = vsyncadd [#allocation4], 4294966784 }
 0x28b   :  { %1218 = dma.done.wait [#allocation12], 512  }
 0x28c   :  { %1219 = vsyncadd [#allocation12], 4294966784 }
 0x28d   :  { %822 = vsyncpa [#allocation3], 1 }
 0x28e   :  { %823 = vsyncpa [#allocation6], 1 }
 0x28f   :  { %824 = vsyncpa [#allocation9], 1 }
 0x290   :  { %825 = vsyncpa [#allocation4], 1 }
 0x291   :  { %826 = vsyncpa [#allocation12], 1 }

</bundles_post_ra>
